<compile_context>
chip_gen: v7x
topology: tpu7x:2x2x1
jax: 0.10.0
libtpu: 0.0.40
codegen_flags: <defaults>
</compile_context>

<pallas_src>
import functools

import jax
import jax.numpy as jnp
from jax.experimental import pallas as pl
from jax.experimental.pallas import tpu as pltpu

LANE = 128            # vreg lane width
ROW_ALIGN = 16        # sublane alignment (works for f32 and bf16 tiles)
MAX_TILE_ROWS = 2048  # (2048,128) f32 block = 1 MiB; 2 inputs x 2 buffers = 4 MiB VMEM


def _round_up(x, m):
    return ((x + m - 1) // m) * m


def _mse_kernel(s_ref, t_ref, o_ref, *, tile_rows):
    """Fold sum((s-t)^2) of this row-tile into a per-core (8,128) partial-sum vreg."""
    step = pl.program_id(1)

    @pl.when(step == 0)
    def _():
        o_ref[...] = jnp.zeros_like(o_ref)

    d = s_ref[...].astype(jnp.float32) - t_ref[...].astype(jnp.float32)
    sq = d * d
    # Reduce the (tile_rows,128) tile to one vreg of partials: pure VPU vector adds
    # (the reshape groups whole sublane octets, so it is layout-free).
    o_ref[...] += sq.reshape(tile_rows // 8, 8, LANE).sum(axis=0)


def _mse_pallas(s_flat, t_flat, n_valid, num_cores, steps_per_core, tile_rows):
    """s_flat/t_flat: 1-D arrays padded to num_cores*steps_per_core*tile_rows*LANE."""
    rows = num_cores * steps_per_core * tile_rows
    s2 = s_flat.reshape(rows, LANE)
    t2 = t_flat.reshape(rows, LANE)

    def in_index_map(c, i):
        return (c * steps_per_core + i, 0)

    kernel = functools.partial(_mse_kernel, tile_rows=tile_rows)

    itemsize = jnp.dtype(s_flat.dtype).itemsize
    cost = pl.CostEstimate(
        flops=3 * rows * LANE,                     # sub, mul, add per element
        transcendentals=0,
        bytes_accessed=2 * rows * LANE * itemsize + num_cores * 8 * LANE * 4,
    )

    partials = pl.pallas_call(
        kernel,
        out_shape=jax.ShapeDtypeStruct((num_cores * 8, LANE), jnp.float32),
        grid_spec=pltpu.PrefetchScalarGridSpec(
            num_scalar_prefetch=0,
            grid=(num_cores, steps_per_core),
            in_specs=[
                pl.BlockSpec((tile_rows, LANE), in_index_map),
                pl.BlockSpec((tile_rows, LANE), in_index_map),
            ],
            # Lane-dense VMEM partial-sum output; resident across the reduction axis.
            out_specs=pl.BlockSpec((8, LANE), lambda c, i: (c, 0)),
        ),
        compiler_params=pltpu.CompilerParams(
            dimension_semantics=("parallel", "arbitrary"),  # cores x reduction steps
        ),
        cost_estimate=cost,
    )(s2, t2)

    # Single tiny cross-lane reduce + divide in plain JAX.
    return jnp.sum(partials) / jnp.float32(n_valid)


def hsmse_forward(y_s, y_t):
    """Pallas equivalent of HSMSE.forward(y_s, y_t).

    y_s, y_t: arrays with leading dim >= 24 (here [24, B, C, H, W]).
    Returns a scalar f32 == mse_loss(y_s[23], y_t[23])  (only the last loop
    iteration of the PyTorch module survives).
    """
    s = y_s[23].reshape(-1)   # native dtype; f32 cast happens inside the kernel
    t = y_t[23].reshape(-1)
    n_valid = s.shape[0]

    # Static tiling plan: pick balanced, aligned row tiles so every block is exact
    # (no ragged edge blocks, no masks). Padding is < ROW_ALIGN rows per grid step
    # plus a partial lane row — negligible; XLA fuses the pad into the slice copy.
    rows0 = pl.cdiv(n_valid, LANE)
    num_cores = 2 if rows0 >= 2 * ROW_ALIGN else 1     # shard across v7x's 2 TCs
    rows_per_core0 = pl.cdiv(rows0, num_cores)
    steps_per_core = pl.cdiv(rows_per_core0, MAX_TILE_ROWS)
    tile_rows = _round_up(pl.cdiv(rows_per_core0, steps_per_core), ROW_ALIGN)
    rows = num_cores * steps_per_core * tile_rows

    pad = rows * LANE - n_valid
    if pad:
        # Zero pad on both tensors contributes (0-0)^2 == 0 to the sum.
        s = jnp.pad(s, (0, pad))
        t = jnp.pad(t, (0, pad))

    return _mse_pallas(s, t, n_valid, num_cores, steps_per_core, tile_rows)


if __name__ == "__main__":
    key = jax.random.PRNGKey(0)
    k1, k2 = jax.random.split(key)
    # 24 stacked feature maps, each NCHW with B=2, C=4, H=W=16.
    shape = (24, 2, 4, 16, 16)
    y_s = jax.random.normal(k1, shape, dtype=jnp.float32)
    y_t = jax.random.normal(k2, shape, dtype=jnp.float32)

    loss = jax.jit(hsmse_forward)(y_s, y_t)
    loss = jax.block_until_ready(loss)

    # Sanity check against pure-JAX reference of the exact PyTorch semantics.
    ref = jnp.mean((y_s[23].astype(jnp.float32) - y_t[23].astype(jnp.float32)) ** 2)
    assert jnp.allclose(loss, ref, rtol=1e-5, atol=1e-6), (loss, ref)

    print("KERNEL_OK")
</pallas_src>

<mosaic_0001>
module attributes {stable_mosaic.version = 11 : i64} {
  func.func @_mse_kernel(%arg0: i32, %arg1: i32, %arg2: memref<16x128xf32, #tpu.memory_space<vmem>>, %arg3: memref<16x128xf32, #tpu.memory_space<vmem>>, %arg4: memref<8x128xf32, #tpu.memory_space<vmem>>) attributes {dimension_semantics = [#tpu.dimension_semantics<parallel>, #tpu.dimension_semantics<arbitrary>], iteration_bounds = array<i64: 1, 1>, scalar_prefetch = 0 : i64, scratch_operands = 0 : i64, tpu.core_type = #tpu.core_type<tc>, window_params = [{transform_indices = @transform_0, window_bounds = array<i64: 16, 128>}, {transform_indices = @transform_1, window_bounds = array<i64: 16, 128>}, {transform_indices = @transform_2, window_bounds = array<i64: 8, 128>}]} {
    %c0_i32 = arith.constant 0 : i32
    %0 = arith.cmpi eq, %arg1, %c0_i32 : i32
    %1 = arith.extui %0 : i1 to i32
    %c0_i32_0 = arith.constant 0 : i32
    %2 = arith.cmpi ne, %1, %c0_i32_0 : i32
    scf.if %2 {
      %cst_8 = arith.constant 0.000000e+00 : f32
      %12 = vector.broadcast %cst_8 : f32 to vector<8x128xf32>
      %c0_9 = arith.constant 0 : index
      %c0_10 = arith.constant 0 : index
      %13 = vector.load %arg4[%c0_9, %c0_10] : memref<8x128xf32, #tpu.memory_space<vmem>>, vector<8x128xf32>
      tpu.vector_store %arg4[%c0_9, %c0_10], %12 {strides = array<i32>} : memref<8x128xf32, #tpu.memory_space<vmem>>, vector<8x128xf32>,
    } else {
    }
    %c0 = arith.constant 0 : index
    %c0_1 = arith.constant 0 : index
    %3 = vector.load %arg2[%c0, %c0_1] : memref<16x128xf32, #tpu.memory_space<vmem>>, vector<16x128xf32>
    %c0_2 = arith.constant 0 : index
    %c0_3 = arith.constant 0 : index
    %4 = vector.load %arg3[%c0_2, %c0_3] : memref<16x128xf32, #tpu.memory_space<vmem>>, vector<16x128xf32>
    %5 = arith.subf %3, %4 : vector<16x128xf32>
    %6 = arith.mulf %5, %5 : vector<16x128xf32>
    %c0_4 = arith.constant 0 : index
    %c0_5 = arith.constant 0 : index
    %7 = vector.load %arg4[%c0_4, %c0_5] : memref<8x128xf32, #tpu.memory_space<vmem>>, vector<8x128xf32>
    %8 = vector.shape_cast %6 : vector<16x128xf32> to vector<2x8x128xf32>
    %cst = arith.constant dense<0.000000e+00> : vector<8x128xf32>
    %9 = vector.multi_reduction <add>, %8, %cst [0] : vector<2x8x128xf32> to vector<8x128xf32>
    %10 = arith.addf %7, %9 : vector<8x128xf32>
    %c0_6 = arith.constant 0 : index
    %c0_7 = arith.constant 0 : index
    %11 = vector.load %arg4[%c0_6, %c0_7] : memref<8x128xf32, #tpu.memory_space<vmem>>, vector<8x128xf32>
    tpu.vector_store %arg4[%c0_6, %c0_7], %10 {strides = array<i32>} : memref<8x128xf32, #tpu.memory_space<vmem>>, vector<8x128xf32>,
    return
  }
  func.func @transform_0(%arg0: i32, %arg1: i32) -> (i32, i32) {
    %c1_i32 = arith.constant 1 : i32
    %0 = arith.muli %arg0, %c1_i32 : i32
    %1 = arith.addi %0, %arg1 : i32
    %c0_i32 = arith.constant 0 : i32
    %c0_i32_0 = arith.constant 0 : i32
    return %1, %c0_i32 : i32, i32
  }
  func.func @transform_1(%arg0: i32, %arg1: i32) -> (i32, i32) {
    %c1_i32 = arith.constant 1 : i32
    %0 = arith.muli %arg0, %c1_i32 : i32
    %1 = arith.addi %0, %arg1 : i32
    %c0_i32 = arith.constant 0 : i32
    %c0_i32_0 = arith.constant 0 : i32
    return %1, %c0_i32 : i32, i32
  }
  func.func @transform_2(%arg0: i32, %arg1: i32) -> (i32, i32) {
    %c0_i32 = arith.constant 0 : i32
    %c0_i32_0 = arith.constant 0 : i32
    return %arg0, %c0_i32 : i32, i32
  }
}

</mosaic_0001>

<bundles_post_ra>
// kernel: squeeze.2
= control target key start
LH: loop header
LB: loop body
LE: loop exit
PB: predicated region body
PF: predicated region fallthrough
CT: control target
= control target key end

     0   :  { %vm4_vm0 = vcmask 1047556   ;;  %s209_s14 = smov 96   ;;  %s210_s19 = smov 112   ;;  %vm6_vm1 = vcmask 130048   ;;  %vm25_vm2 = vcmask 1048448   ;;  %vm46_vm3 = vcmask 917248   ;;  %s388_s0 = inlined_call_operand.vmem [shape: f32[2,4,16,16], index: 0, kind: input, shape index: {}]   ;;  %s389_s1 = inlined_call_operand.vmem [shape: f32[16,128], index: 1, kind: output, shape index: {}]  }
   0x1   :  { %v172_v0 = vld [vmem:[%s388_s0 + $0x6] ss:$8 sm:$0xf]   ;;  %v167_v3 = vld [vmem:[%s388_s0 + $0x7] ss:$8 sm:$0xf]  }
   0x2   :  { %v173_v1 = vld [vmem:[%s388_s0 + $0x6] ss:$8 sm:$0xf0]   ;;  %v168_v4 = vld [vmem:[%s388_s0 + $0x7] ss:$8 sm:$0xf0]  }
   0x3   :  { %v43_v2 = vsel %vm4_vm0, %v173_v1, %v172_v0  ;;  %v22_v5 = vsel %vm4_vm0, %v168_v4, %v167_v3  ;;  %v174_v6 = vld [vmem:[%s388_s0 + $0x46] ss:$8 sm:$0xf]   ;;  %v169_v9 = vld [vmem:[%s388_s0 + $0x47] ss:$8 sm:$0xf]  }
   0x4   :  { %44 = vrot.lane.b32.xlu1 %v43_v2, %s209_s14  ;;  %v175_v7 = vld [vmem:[%s388_s0 + $0x46] ss:$8 sm:$0xf0]   ;;  %23 = vrot.lane.b32.xlu0 %v22_v5, %s210_s19  ;;  %v170_v10 = vld [vmem:[%s388_s0 + $0x47] ss:$8 sm:$0xf0]  }
   0x5   :  { %v53_v8 = vsel %vm4_vm0, %v175_v7, %v174_v6  ;;  %v32_v11 = vsel %vm4_vm0, %v170_v10, %v169_v9  ;;  %v179_v12 = vld [vmem:[%s388_s0 + $0x45] ss:$8 sm:$0xf]   ;;  %v184_v18 = vld [vmem:[%s388_s0 + $0x44] ss:$8 sm:$0xf]  }
   0x6   :  { %v180_v13 = vld [vmem:[%s388_s0 + $0x45] ss:$8 sm:$0xf0]   ;;  %v185_v19 = vld [vmem:[%s388_s0 + $0x44] ss:$8 sm:$0xf0]  }
   0x7   :  { %v177_v14 = vld [vmem:[%s388_s0 + $0x5] ss:$8 sm:$0xf]   ;;  %v74_v16 = vsel %vm4_vm0, %v180_v13, %v179_v12  ;;  %v182_v20 = vld [vmem:[%s388_s0 + $0x4] ss:$8 sm:$0xf]   ;;  %v95_v22 = vsel %vm4_vm0, %v185_v19, %v184_v18 }
   0x8   :  { %54 = vrot.lane.b32.xlu1 %v53_v8, %s209_s14  ;;  %v178_v15 = vld [vmem:[%s388_s0 + $0x5] ss:$8 sm:$0xf0]   ;;  %33 = vrot.lane.b32.xlu0 %v32_v11, %s210_s19  ;;  %v183_v21 = vld [vmem:[%s388_s0 + $0x4] ss:$8 sm:$0xf0]  }
   0x9   :  { %v64_v17 = vsel %vm4_vm0, %v178_v15, %v177_v14  ;;  %s211_s11 = smov 80   ;;  %v85_v23 = vsel %vm4_vm0, %v183_v21, %v182_v20  ;;  %v189_v24 = vld [vmem:[%s388_s0 + $0x43] ss:$8 sm:$0xf]   ;;  %s212_s20 = smov 64   ;;  %vm67_vm4 = vcmask 786048  }
   0xa   :  { %v190_v25 = vld [vmem:[%s388_s0 + $0x43] ss:$8 sm:$0xf0]   ;;  %v194_v28 = vld [vmem:[%s388_s0 + $0x42] ss:$8 sm:$0xf]  }
   0xb   :  { %v187_v26 = vld [vmem:[%s388_s0 + $0x3] ss:$8 sm:$0xf]   ;;  %v195_v29 = vld [vmem:[%s388_s0 + $0x42] ss:$8 sm:$0xf0]   ;;  %v116_v30 = vsel %vm4_vm0, %v190_v25, %v189_v24 }
   0xc   :  { %75 = vrot.lane.b32.xlu1 %v74_v16, %s211_s11  ;;  %65 = vrot.lane.b32.xlu0 %v64_v17, %s211_s11  ;;  %v188_v27 = vld [vmem:[%s388_s0 + $0x3] ss:$8 sm:$0xf0]   ;;  %v192_v31 = vld [vmem:[%s388_s0 + $0x2] ss:$8 sm:$0xf]   ;;  %v137_v40 = vsel %vm4_vm0, %v195_v29, %v194_v28 }
   0xd   :  { %v2_v32 = vld [vmem:[%s388_s0] ss:$8 sm:$0xf]   ;;  %v106_v33 = vsel %vm4_vm0, %v188_v27, %v187_v26  ;;  %v193_v36 = vld [vmem:[%s388_s0 + $0x2] ss:$8 sm:$0xf0]  }
   0xe   :  { %v3_v34 = vld [vmem:[%s388_s0] ss:$8 sm:$0xf0]   ;;  %s213_s8 = smov 48   ;;  %v127_v41 = vsel %vm4_vm0, %v193_v36, %v192_v31  ;;  %s215_s21 = smov 16   ;;  %vm88_vm5 = vcmask 654848  }
   0xf   :  { %v164_v35 = vld [vmem:[%s388_s0 + $0x40] ss:$8 sm:$0xf]   ;;  %v5_v37 = vsel %vm4_vm0, %v3_v34, %v2_v32  ;;  %v199_v42 = vld [vmem:[%s388_s0 + $0x41] ss:$8 sm:$0xf]  }
  0x10   :  { %96 = vrot.lane.b32.xlu1 %v95_v22, %s212_s20  ;;  %86 = vrot.lane.b32.xlu0 %v85_v23, %s212_s20  ;;  %v165_v38 = vld [vmem:[%s388_s0 + $0x40] ss:$8 sm:$0xf0]   ;;  %7 = vst.msk [vmem:[%s389_s1] sm:$0xff] %vm6_vm1, %v5_v37   ;;  %vm109_vm6 = vcmask 523648   ;;  %vm130_vm7 = vcmask 392448  }
  0x11   :  { %v13_v39 = vsel %vm4_vm0, %v165_v38, %v164_v35  ;;  %v200_v43 = vld [vmem:[%s388_s0 + $0x41] ss:$8 sm:$0xf0]   ;;  %vm151_vm8 = vcmask 261248  }
  0x12   :  { %166 = vst.msk [vmem:[%s389_s1 + $0x8] sm:$0xff] %vm6_vm1, %v13_v39   ;;  %v197_v44 = vld [vmem:[%s388_s0 + $0x1] ss:$8 sm:$0xf]   ;;  %v158_v46 = vsel %vm4_vm0, %v200_v43, %v199_v42 }
  0x13   :  { %v198_v45 = vld [vmem:[%s388_s0 + $0x1] ss:$8 sm:$0xf0]   ;;  %s214_s0 = smov 32  }
  0x14   :  { %117 = vrot.lane.b32.xlu1 %v116_v30, %s213_s8  ;;  %107 = vrot.lane.b32.xlu0 %v106_v33, %s213_s8  ;;  %v148_v47 = vsel %vm4_vm0, %v198_v45, %v197_v44 }
  0x18   :  { %138 = vrot.lane.b32.xlu1 %v137_v40, %s214_s0  ;;  %128 = vrot.lane.b32.xlu0 %v127_v41, %s214_s0 }
  0x1c   :  { %159 = vrot.lane.b32.xlu1 %v158_v46, %s215_s21  ;;  %149 = vrot.lane.b32.xlu0 %v148_v47, %s215_s21 }
  0x76   :  { %v45_v48 = vpop.permute.xlu1 %44   ;;  %v24_v49 = vpop.permute.xlu0 %23  }
  0x77   :  { %26 = vst.msk [vmem:[%s389_s1] sm:$0xff] %vm25_vm2, %v24_v49  }
  0x78   :  { %47 = vst.msk [vmem:[%s389_s1] sm:$0xff] %vm46_vm3, %v45_v48  }
  0x7a   :  { %v55_v50 = vpop.permute.xlu1 %54   ;;  %v34_v51 = vpop.permute.xlu0 %33  }
  0x7b   :  { %171 = vst.msk [vmem:[%s389_s1 + $0x8] sm:$0xff] %vm25_vm2, %v34_v51  }
  0x7c   :  { %176 = vst.msk [vmem:[%s389_s1 + $0x8] sm:$0xff] %vm46_vm3, %v55_v50  }
  0x7e   :  { %v76_v52 = vpop.permute.xlu1 %75   ;;  %v66_v53 = vpop.permute.xlu0 %65  }
  0x7f   :  { %181 = vst.msk [vmem:[%s389_s1 + $0x8] sm:$0xff] %vm67_vm4, %v76_v52   ;;  %68 = vst.msk [vmem:[%s389_s1] sm:$0xff] %vm67_vm4, %v66_v53  }
  0x82   :  { %v97_v54 = vpop.permute.xlu1 %96   ;;  %v87_v55 = vpop.permute.xlu0 %86  }
  0x83   :  { %186 = vst.msk [vmem:[%s389_s1 + $0x8] sm:$0xff] %vm88_vm5, %v97_v54   ;;  %89 = vst.msk [vmem:[%s389_s1] sm:$0xff] %vm88_vm5, %v87_v55  }
  0x86   :  { %v118_v56 = vpop.permute.xlu1 %117   ;;  %v108_v57 = vpop.permute.xlu0 %107  }
  0x87   :  { %191 = vst.msk [vmem:[%s389_s1 + $0x8] sm:$0xff] %vm109_vm6, %v118_v56   ;;  %110 = vst.msk [vmem:[%s389_s1] sm:$0xff] %vm109_vm6, %v108_v57  }
  0x8a   :  { %v139_v58 = vpop.permute.xlu1 %138   ;;  %v129_v59 = vpop.permute.xlu0 %128  }
  0x8b   :  { %196 = vst.msk [vmem:[%s389_s1 + $0x8] sm:$0xff] %vm130_vm7, %v139_v58   ;;  %131 = vst.msk [vmem:[%s389_s1] sm:$0xff] %vm130_vm7, %v129_v59  }
  0x8e   :  { %v160_v60 = vpop.permute.xlu1 %159   ;;  %v150_v61 = vpop.permute.xlu0 %149  }
  0x8f   :  { %201 = vst.msk [vmem:[%s389_s1 + $0x8] sm:$0xff] %vm151_vm8, %v160_v60   ;;  %152 = vst.msk [vmem:[%s389_s1] sm:$0xff] %vm151_vm8, %v150_v61  }

// kernel: hsmse_forward.1
= control target key start
LH: loop header
LB: loop body
LE: loop exit
PB: predicated region body
PF: predicated region fallthrough
CT: control target
= control target key end

     0   :  { %s119_s0 = inlined_call_operand.vmem [shape: f32[16,128], index: 0, kind: input, shape index: {}]   ;;  %s120_s1 = inlined_call_operand.vmem [shape: f32[16,128], index: 1, kind: input, shape index: {}]   ;;  %s121_s2 = inlined_call_operand.vmem [shape: f32[8,128], index: 2, kind: output, shape index: {}]  }
   0x1   :  { %v60_v0 = vld [vmem:[%s119_s0] sm:$0xff]  ;;  %v61_v1 = vld [vmem:[%s119_s0 + $0x8] sm:$0xff] }
   0x2   :  { %v62_v2 = vld [vmem:[%s120_s1] sm:$0xff]  ;;  %v63_v3 = vld [vmem:[%s120_s1 + $0x8] sm:$0xff] }
   0x3   :  { %v64_v4 = vsub.f32 %v60_v0, %v62_v2  ;;  %v65_v5 = vsub.f32 %v61_v1, %v63_v3 }
   0x5   :  { %v66_v6 = vmul.f32 %v64_v4, %v64_v4  ;;  %v67_v7 = vmul.f32 %v65_v5, %v65_v5 }
   0x7   :  { %v69_v8 = vadd.f32 %v67_v7, %v66_v6 }
   0x9   :  { %71 = vst [vmem:[%s121_s2] sm:$0xff] %v69_v8 }

</bundles_post_ra>
